<compile_context>
chip_gen: v6e
topology: v6e:2x2x1
jax: 0.10.0
libtpu: 0.0.40
codegen_flags: <defaults>
</compile_context>

<pallas_src>
import jax
import jax.numpy as jnp
from jax import lax
from jax.experimental import pallas as pl
from jax.experimental.pallas import tpu as pltpu


def _memory_module_kernel(x_ref, mem_ref, w_ref, b_ref, read_out_ref, upd_ref):
    i = pl.program_id(1)          # reduction ("arbitrary") axis
    m = mem_ref.shape[0]

    x = x_ref[...]                # (TN, H), native dtype (no upcast)

    # Fused read+write head logits: one MXU pass -> (TN, 2M) f32.
    logits = jnp.dot(x, w_ref[...], preferred_element_type=jnp.float32)
    logits = logits + b_ref[...]  # bias pre-cast to f32 in the wrapper (no per-step astype)

    r_logits = logits[:, :m]
    w_logits = logits[:, m:]

    # ---- read head softmax (f32 throughout; EUP approx reciprocal keeps divide off the VALU) ----
    r_logits = r_logits - jnp.max(r_logits, axis=-1, keepdims=True)
    r_exp = jnp.exp(r_logits)
    read_w = r_exp * pl.reciprocal(jnp.sum(r_exp, axis=-1, keepdims=True), approx=True)

    # read_memory uses the OLD memory (the PyTorch in-place update happens after this matmul).
    # Cast the small weight matrix down to the memory dtype (identity when memory is f32) instead
    # of upcasting the resident memory operand every grid step.
    read_out_ref[...] = jnp.dot(
        read_w.astype(mem_ref.dtype), mem_ref[...],
        preferred_element_type=jnp.float32).astype(read_out_ref.dtype)

    # ---- write head softmax (f32) ----
    w_logits = w_logits - jnp.max(w_logits, axis=-1, keepdims=True)
    w_exp = jnp.exp(w_logits)
    write_w = w_exp * pl.reciprocal(jnp.sum(w_exp, axis=-1, keepdims=True), approx=True)

    # sum_n outer(write_w[n], x[n]) == write_w^T @ x, expressed as a transposed-LHS contraction
    # (contract dim 0 of both operands) so no XLU transpose is materialized; f32 accumulate.
    mem_update = lax.dot_general(
        write_w.astype(x.dtype), x,
        dimension_numbers=(((0,), (0,)), ((), ())),
        preferred_element_type=jnp.float32)          # (M, H) f32

    # Per-core partial accumulator lives directly in the resident (squeezed) output block.
    @pl.when(i == 0)
    def _():
        upd_ref[...] = mem_update

    @pl.when(i != 0)
    def _():
        upd_ref[...] += mem_update


def _choose_grid(n, h, elem_bytes, tile_n=None):
    """Pick (n_splits, tile_n).  n_splits=2 lets the v7x megacore shard the parallel axis;
    on single-TC chips that axis simply serializes at negligible cost."""
    if tile_n is not None:
        for c in (2, 1):
            if n % (c * tile_n) == 0 and (tile_n % 8 == 0 or tile_n == n):
                return c, tile_n
        raise ValueError(
            f"tile_n={tile_n} must divide N={n} (per core split) and satisfy the (8,128) rule")
    # VMEM budget for the pipelined tiles: 2 double-buffered (tn, H) slabs (x in, read out).
    budget = 8 << 20
    for c in (2, 1):
        for tn in (4096, 2048, 1024, 512, 256, 128, 64, 32, 16, 8):
            if n % (c * tn) == 0 and 4 * tn * h * elem_bytes <= budget:
                return c, tn
    return 1, n  # full-extent single block fallback (block dim == array dim -> no (8,128) issue)


def memory_module_forward(x, memory, wr, br, ww, bw, *, tile_n=None):
    """x: (B, S, H) or (S, H).  wr/ww: (H, M) (transposed Linear weights), br/bw: (1, M).

    Returns (read_memory (B, S, H), new_memory (M, H)).  new_memory is the updated memory
    (mirrors the PyTorch in-place update); the input `memory` array is NOT modified/donated."""
    if x.ndim == 2:
        x = x[None, ...]          # mirrors the PyTorch unsqueeze path
    B, S, H = x.shape
    M = memory.shape[0]
    N = B * S
    x_flat = x.reshape(N, H)

    # Fuse the two heads into a single MXU operand and hoist all dtype casts out of the kernel.
    w_cat = jnp.concatenate([wr, ww], axis=1).astype(x.dtype)       # (H, 2M)
    b_cat = jnp.concatenate([br, bw], axis=1).astype(jnp.float32)   # (1, 2M)

    n_splits, tn = _choose_grid(N, H, jnp.dtype(x.dtype).itemsize, tile_n)
    steps = N // (n_splits * tn)
    grid = (n_splits, steps)

    full = lambda shape: pl.BlockSpec(shape, lambda c, i: tuple(0 for _ in shape))

    read_flat, upd_partial = pl.pallas_call(
        _memory_module_kernel,
        out_shape=(
            jax.ShapeDtypeStruct((N, H), x.dtype),
            jax.ShapeDtypeStruct((n_splits, M, H), jnp.float32),
        ),
        grid=grid,
        in_specs=[
            pl.BlockSpec((tn, H), lambda c, i: (c * steps + i, 0)),   # x tile, pipelined over N
            full((M, H)),                                             # memory (resident, read-only)
            full((H, 2 * M)),                                         # fused head weights
            full((1, 2 * M)),                                         # fused head biases (f32)
        ],
        out_specs=(
            pl.BlockSpec((tn, H), lambda c, i: (c * steps + i, 0)),   # read_memory tile
            pl.BlockSpec((None, M, H), lambda c, i: (c, 0, 0)),       # per-core partial update
        ),
        compiler_params=pltpu.CompilerParams(
            dimension_semantics=("parallel", "arbitrary")),           # core split x reduction
    )(x_flat, memory, w_cat, b_cat)

    # Tiny (M*H elems) finalize in the wrapper: combine per-core partials and add to old memory.
    new_memory = (memory.astype(jnp.float32) + upd_partial.sum(axis=0)).astype(memory.dtype)
    return read_flat.reshape(B, S, H), new_memory


if __name__ == "__main__":
    # Small shapes consistent with the module: batch=2, seq=16, hidden=32, memory_size=16.
    B, S, H, M = 2, 16, 32, 16

    key = jax.random.PRNGKey(0)
    k_x, k_mem, k_wr, k_br, k_ww, k_bw = jax.random.split(key, 6)

    x = jax.random.normal(k_x, (B, S, H), dtype=jnp.float32)
    memory = jax.random.normal(k_mem, (M, H), dtype=jnp.float32)
    # Linear(hidden_size, memory_size): weight (M, H), stored transposed as (H, M).
    wr = jax.random.normal(k_wr, (H, M), dtype=jnp.float32) * (1.0 / jnp.sqrt(H))
    br = jax.random.normal(k_br, (1, M), dtype=jnp.float32) * 0.01
    ww = jax.random.normal(k_ww, (H, M), dtype=jnp.float32) * (1.0 / jnp.sqrt(H))
    bw = jax.random.normal(k_bw, (1, M), dtype=jnp.float32) * 0.01

    # tile_n=8 -> grid (2, 2): exercises the core-split parallel axis AND the multi-step
    # reduction (partial-accumulator init at i==0, accumulate at i>0).
    read_memory, new_memory = memory_module_forward(x, memory, wr, br, ww, bw, tile_n=8)
    jax.block_until_ready((read_memory, new_memory))

    # Pure-JAX reference check (uses the ORIGINAL memory; the kernel does not alias/donate it).
    xf = x.reshape(B * S, H)
    rw = jax.nn.softmax(xf @ wr + br, axis=-1)
    ref_read = (rw @ memory).reshape(B, S, H)
    wwgt = jax.nn.softmax(xf @ ww + bw, axis=-1)
    ref_new_mem = memory + wwgt.T @ xf

    # Slightly relaxed tolerance because of the EUP approximate reciprocal in the softmax.
    assert jnp.allclose(read_memory, ref_read, atol=5e-3, rtol=5e-3), float(
        jnp.max(jnp.abs(read_memory - ref_read)))
    assert jnp.allclose(new_memory, ref_new_mem, atol=5e-3, rtol=5e-3), float(
        jnp.max(jnp.abs(new_memory - ref_new_mem)))

    print("KERNEL_OK")
</pallas_src>

<mosaic_0001>
module attributes {stable_mosaic.version = 11 : i64} {
  func.func @_memory_module_kernel(%arg0: i32, %arg1: i32, %arg2: memref<8x32xf32, #tpu.memory_space<vmem>>, %arg3: memref<16x32xf32, #tpu.memory_space<vmem>>, %arg4: memref<32x32xf32, #tpu.memory_space<vmem>>, %arg5: memref<1x32xf32, #tpu.memory_space<vmem>>, %arg6: memref<8x32xf32, #tpu.memory_space<vmem>>, %arg7: memref<1x16x32xf32, #tpu.memory_space<vmem>>) attributes {dimension_semantics = [#tpu.dimension_semantics<parallel>, #tpu.dimension_semantics<arbitrary>], iteration_bounds = array<i64: 2, 2>, scalar_prefetch = 0 : i64, scratch_operands = 0 : i64, tpu.core_type = #tpu.core_type<tc>, window_params = [{transform_indices = @transform_0, window_bounds = array<i64: 8, 32>}, {pipeline_mode = #tpu.pipeline_mode<synchronous>, transform_indices = @transform_1, window_bounds = array<i64: 16, 32>}, {pipeline_mode = #tpu.pipeline_mode<synchronous>, transform_indices = @transform_2, window_bounds = array<i64: 32, 32>}, {pipeline_mode = #tpu.pipeline_mode<synchronous>, transform_indices = @transform_3, window_bounds = array<i64: 1, 32>}, {transform_indices = @transform_4, window_bounds = array<i64: 8, 32>}, {transform_indices = @transform_5, window_bounds = array<i64: 1, 16, 32>}]} {
    %c0 = arith.constant 0 : index
    %c0_0 = arith.constant 0 : index
    %0 = vector.load %arg2[%c0, %c0_0] : memref<8x32xf32, #tpu.memory_space<vmem>>, vector<8x32xf32>
    %c0_1 = arith.constant 0 : index
    %c0_2 = arith.constant 0 : index
    %1 = vector.load %arg4[%c0_1, %c0_2] : memref<32x32xf32, #tpu.memory_space<vmem>>, vector<32x32xf32>
    %cst = arith.constant dense<0.000000e+00> : vector<8x32xf32>
    %2 = tpu.matmul %0, %1, %cst {dimension_numbers = #tpu.dot_dimension_numbers<[1], [0], [0], [1], [0, 0, 1, 1], [], []>} : vector<8x32xf32>, vector<32x32xf32>, vector<8x32xf32> -> vector<8x32xf32>
    %c0_3 = arith.constant 0 : index
    %c0_4 = arith.constant 0 : index
    %3 = vector.load %arg5[%c0_3, %c0_4] : memref<1x32xf32, #tpu.memory_space<vmem>>, vector<1x32xf32>
    %4 = vector.broadcast %3 : vector<1x32xf32> to vector<8x32xf32>
    %5 = arith.addf %2, %4 : vector<8x32xf32>
    %6 = vector.extract_strided_slice %5 {offsets = [0, 0], sizes = [8, 16], strides = [1, 1]} : vector<8x32xf32> to vector<8x16xf32>
    %7 = vector.extract_strided_slice %5 {offsets = [0, 16], sizes = [8, 16], strides = [1, 1]} : vector<8x32xf32> to vector<8x16xf32>
    %cst_5 = arith.constant dense<0xFF800000> : vector<8xf32>
    %8 = vector.multi_reduction <maximumf>, %6, %cst_5 [1] : vector<8x16xf32> to vector<8xf32>
    %9 = vector.shape_cast %8 : vector<8xf32> to vector<8x1xf32>
    %10 = vector.broadcast %9 : vector<8x1xf32> to vector<8x16xf32>
    %11 = arith.subf %6, %10 : vector<8x16xf32>
    %12 = math.exp %11 : vector<8x16xf32>
    %cst_6 = arith.constant dense<0.000000e+00> : vector<8xf32>
    %13 = vector.multi_reduction <add>, %12, %cst_6 [1] : vector<8x16xf32> to vector<8xf32>
    %14 = vector.shape_cast %13 : vector<8xf32> to vector<8x1xf32>
    %15 = tpu.reciprocal %14 {approx = true} : vector<8x1xf32> -> vector<8x1xf32>
    %16 = vector.broadcast %15 : vector<8x1xf32> to vector<8x16xf32>
    %17 = arith.mulf %12, %16 : vector<8x16xf32>
    %c0_7 = arith.constant 0 : index
    %c0_8 = arith.constant 0 : index
    %18 = vector.load %arg3[%c0_7, %c0_8] : memref<16x32xf32, #tpu.memory_space<vmem>>, vector<16x32xf32>
    %cst_9 = arith.constant dense<0.000000e+00> : vector<8x32xf32>
    %19 = tpu.matmul %17, %18, %cst_9 {dimension_numbers = #tpu.dot_dimension_numbers<[1], [0], [0], [1], [0, 0, 1, 1], [], []>} : vector<8x16xf32>, vector<16x32xf32>, vector<8x32xf32> -> vector<8x32xf32>
    %c0_10 = arith.constant 0 : index
    %c0_11 = arith.constant 0 : index
    %20 = vector.load %arg6[%c0_10, %c0_11] : memref<8x32xf32, #tpu.memory_space<vmem>>, vector<8x32xf32>
    tpu.vector_store %arg6[%c0_10, %c0_11], %19 {strides = array<i32>} : memref<8x32xf32, #tpu.memory_space<vmem>>, vector<8x32xf32>,
    %cst_12 = arith.constant dense<0xFF800000> : vector<8xf32>
    %21 = vector.multi_reduction <maximumf>, %7, %cst_12 [1] : vector<8x16xf32> to vector<8xf32>
    %22 = vector.shape_cast %21 : vector<8xf32> to vector<8x1xf32>
    %23 = vector.broadcast %22 : vector<8x1xf32> to vector<8x16xf32>
    %24 = arith.subf %7, %23 : vector<8x16xf32>
    %25 = math.exp %24 : vector<8x16xf32>
    %cst_13 = arith.constant dense<0.000000e+00> : vector<8xf32>
    %26 = vector.multi_reduction <add>, %25, %cst_13 [1] : vector<8x16xf32> to vector<8xf32>
    %27 = vector.shape_cast %26 : vector<8xf32> to vector<8x1xf32>
    %28 = tpu.reciprocal %27 {approx = true} : vector<8x1xf32> -> vector<8x1xf32>
    %29 = vector.broadcast %28 : vector<8x1xf32> to vector<8x16xf32>
    %30 = arith.mulf %25, %29 : vector<8x16xf32>
    %cst_14 = arith.constant dense<0.000000e+00> : vector<16x32xf32>
    %31 = tpu.matmul %30, %0, %cst_14 {dimension_numbers = #tpu.dot_dimension_numbers<[0], [0], [1], [1], [0, 1, 1, 1], [], []>} : vector<8x16xf32>, vector<8x32xf32>, vector<16x32xf32> -> vector<16x32xf32>
    %c0_i32 = arith.constant 0 : i32
    %32 = arith.cmpi eq, %arg1, %c0_i32 : i32
    %33 = arith.extui %32 : i1 to i32
    %c0_i32_15 = arith.constant 0 : i32
    %34 = arith.cmpi ne, %33, %c0_i32_15 : i32
    scf.if %34 {
      %c0_18 = arith.constant 0 : index
      %c0_19 = arith.constant 0 : index
      %c0_20 = arith.constant 0 : index
      %38 = vector.load %arg7[%c0_18, %c0_19, %c0_20] : memref<1x16x32xf32, #tpu.memory_space<vmem>>, vector<1x16x32xf32>
      %39 = vector.shape_cast %38 : vector<1x16x32xf32> to vector<16x32xf32>
      %40 = vector.shape_cast %31 : vector<16x32xf32> to vector<1x16x32xf32>
      tpu.vector_store %arg7[%c0_18, %c0_19, %c0_20], %40 {strides = array<i32>} : memref<1x16x32xf32, #tpu.memory_space<vmem>>, vector<1x16x32xf32>,
    } else {
    }
    %c0_i32_16 = arith.constant 0 : i32
    %35 = arith.cmpi ne, %arg1, %c0_i32_16 : i32
    %36 = arith.extui %35 : i1 to i32
    %c0_i32_17 = arith.constant 0 : i32
    %37 = arith.cmpi ne, %36, %c0_i32_17 : i32
    scf.if %37 {
      %c0_18 = arith.constant 0 : index
      %c0_19 = arith.constant 0 : index
      %c0_20 = arith.constant 0 : index
      %38 = vector.load %arg7[%c0_18, %c0_19, %c0_20] : memref<1x16x32xf32, #tpu.memory_space<vmem>>, vector<1x16x32xf32>
      %39 = vector.shape_cast %38 : vector<1x16x32xf32> to vector<16x32xf32>
      %40 = arith.addf %39, %31 : vector<16x32xf32>
      %c0_21 = arith.constant 0 : index
      %c0_22 = arith.constant 0 : index
      %c0_23 = arith.constant 0 : index
      %41 = vector.load %arg7[%c0_21, %c0_22, %c0_23] : memref<1x16x32xf32, #tpu.memory_space<vmem>>, vector<1x16x32xf32>
      %42 = vector.shape_cast %41 : vector<1x16x32xf32> to vector<16x32xf32>
      %43 = vector.shape_cast %40 : vector<16x32xf32> to vector<1x16x32xf32>
      tpu.vector_store %arg7[%c0_21, %c0_22, %c0_23], %43 {strides = array<i32>} : memref<1x16x32xf32, #tpu.memory_space<vmem>>, vector<1x16x32xf32>,
    } else {
    }
    return
  }
  func.func @transform_0(%arg0: i32, %arg1: i32) -> (i32, i32) {
    %c2_i32 = arith.constant 2 : i32
    %0 = arith.muli %arg0, %c2_i32 : i32
    %1 = arith.addi %0, %arg1 : i32
    %c0_i32 = arith.constant 0 : i32
    %c0_i32_0 = arith.constant 0 : i32
    return %1, %c0_i32 : i32, i32
  }
  func.func @transform_1(%arg0: i32, %arg1: i32) -> (i32, i32) {
    %c0_i32 = arith.constant 0 : i32
    %c0_i32_0 = arith.constant 0 : i32
    %c0_i32_1 = arith.constant 0 : i32
    return %c0_i32, %c0_i32_0 : i32, i32
  }
  func.func @transform_2(%arg0: i32, %arg1: i32) -> (i32, i32) {
    %c0_i32 = arith.constant 0 : i32
    %c0_i32_0 = arith.constant 0 : i32
    %c0_i32_1 = arith.constant 0 : i32
    return %c0_i32, %c0_i32_0 : i32, i32
  }
  func.func @transform_3(%arg0: i32, %arg1: i32) -> (i32, i32) {
    %c0_i32 = arith.constant 0 : i32
    %c0_i32_0 = arith.constant 0 : i32
    %c0_i32_1 = arith.constant 0 : i32
    return %c0_i32, %c0_i32_0 : i32, i32
  }
  func.func @transform_4(%arg0: i32, %arg1: i32) -> (i32, i32) {
    %c2_i32 = arith.constant 2 : i32
    %0 = arith.muli %arg0, %c2_i32 : i32
    %1 = arith.addi %0, %arg1 : i32
    %c0_i32 = arith.constant 0 : i32
    %c0_i32_0 = arith.constant 0 : i32
    return %1, %c0_i32 : i32, i32
  }
  func.func @transform_5(%arg0: i32, %arg1: i32) -> (i32, i32, i32) {
    %c0_i32 = arith.constant 0 : i32
    %c0_i32_0 = arith.constant 0 : i32
    %c0_i32_1 = arith.constant 0 : i32
    return %arg0, %c0_i32, %c0_i32_0 : i32, i32, i32
  }
}

</mosaic_0001>

<bundles_post_ra>
// kernel: tpu_custom_call.1
= control target key start
LH: loop header
LB: loop body
LE: loop exit
PB: predicated region body
PF: predicated region fallthrough
CT: control target
= control target key end

     0   :  { %s1607_s0 = inlined_call_operand.hbm [shape: f32[32,32], index: 0, kind: input, shape index: {}]   ;;  %s1608_s1 = inlined_call_operand.hbm [shape: f32[16,32], index: 1, kind: input, shape index: {}]   ;;  %s1609_s2 = inlined_call_operand.hbm [shape: f32[32,32], index: 2, kind: input, shape index: {}]   ;;  %s1610_s3 = inlined_call_operand.vmem [shape: f32[1,32], index: 3, kind: input, shape index: {}]   ;;  %s1611_s4 = inlined_call_operand.hbm [shape: f32[32,32], index: 4, kind: output, shape index: {0}]   ;;  %s1612_s5 = inlined_call_operand.hbm [shape: f32[2,16,32], index: 5, kind: output, shape index: {1}]  }
   0x1   :  { %1630 = sst [smem:[#allocation24_spill]] %s1608_s1 }
   0x2   :  { %1631 = sst [smem:[#allocation25_spill]] %s1609_s2 }
   0x3   :  { %1632 = sst [smem:[#allocation26_spill]] %s1611_s4 }
   0x4   :  { %1633 = sst [smem:[#allocation27_spill]] %s1612_s5 }
   0x5   :  { %11 = vsyncpa [#allocation3], 0 }
   0x6   :  { %13 = vsyncpa [#allocation3 + $0x1], 0 }
   0x7   :  { %14 = vsyncpa [#allocation6], 0 }
   0x8   :  { %15 = vsyncpa [#allocation4], 0 }
   0x9   :  { %17 = vsyncpa [#allocation4 + $0x1], 0 }
   0xa   :  { %18 = vsyncpa [#allocation10], 0 }
   0xb   :  { %20 = vsyncpa [#allocation10 + $0x1], 0  ;;  %s1293_s18 = smov 0   ;;  %s1295_s19 = smov 0  }
   0xc   :  { %s1297_s20 = smov 0   ;;  %s1299_s21 = smov 0  }
   0xd   :  { %s1301_s22 = smov 0   ;;  %s1303_s23 = smov 0  }
   0xe   :  { %s1305_s24 = smov 0   ;;  %s1307_s25 = smov 0  }
   0xf   :  { %s1309_s26 = smov 0   ;;  %s1311_s27 = smov 0  }
  0x10   :  { %s1313_s28 = smov 0  }
  0x11 LB: > { %1634 = sst [smem:[#allocation15_spill]] %s1209_s18  ;;  %s803_s29 = sadd.s32 4294967295, %s1249_s28   ;;  %s1249_s28 = sphi %s1313_s28, %s26_s28   ;;  %s1245_s27 = sphi %s1311_s27, %s1685_s27   ;;  %s1241_s26 = sphi %s1309_s26, %s1684_s26   ;;  %s1237_s25 = sphi %s1307_s25, %s1683_s25   ;;  %s1233_s24 = sphi %s1305_s24, %s1675_s24   ;;  %s1229_s23 = sphi %s1303_s23, %s1682_s23   ;;  %s1225_s22 = sphi %s1301_s22, %s1681_s22   ;;  %s1221_s21 = sphi %s1299_s21, %s1680_s21   ;;  %s1217_s20 = sphi %s1297_s20, %s1679_s20   ;;  %s1213_s19 = sphi %s1295_s19, %s1678_s19   ;;  %s1209_s18 = sphi %s1293_s18, %s1677_s18  }
  0x12   : > { %1635 = sst [smem:[#allocation16_spill]] %s1221_s21  ;;  %s804_s30 = sadd.s32 4294967294, %s1249_s28  }
  0x13   : > { %1636 = sst [smem:[#allocation17_spill]] %s1233_s24  ;;  %p62_p0 = scmp.ne.s32.totalorder %s1225_s22, %s1221_s21 }
  0x14   : > { %1637 = sst [smem:[#allocation18_spill]] %s1237_s25  ;;  %p1352_p1 = scmp.eq.s32.totalorder %s803_s29, 0 }
  0x15   : > { %1638 = sst [smem:[#allocation19_spill]] %s1241_s26  ;;  %p1356_p2 = scmp.eq.s32.totalorder %s803_s29, 3 }
  0x16   : > { %s1639_s6 = scalar_select %p1352_p1, 1, 0 }
  0x17   : > { %p159_p3 = scmp.eq.s32.totalorder %s804_s30, 3  ;;  %p1362_p4 = por %p1352_p1, %p62_p0 }
  0x18   : > { %p178_p5 = scmp.ne.s32.totalorder %s1217_s20, %s1213_s19  ;;  %p184_p7 = scmp.ne.s32.totalorder %s1213_s19, %s1209_s18 }
  0x19   : > { %s1641_s8 = scalar_select %p1362_p4, 1, 0 }
  0x1a   : > { %p1368_p6 = por %p159_p3, %p62_p0  ;;  %p1376_p8 = por %p178_p5, %p1356_p2 }
  0x1b   : > { %p809_p9 = scmp.ge.s32.totalorder %s1249_s28, 1  ;;  %p1381_p10 = por %p184_p7, %p159_p3 }
  0x1c   : > { %s1642_s9 = scalar_select %p1368_p6, 1, 0 }
  0x1d   : > { %s1644_s10 = scalar_select %p1376_p8, 1, 0 }
  0x1e   : > { %1643 = sst [smem:[#allocation20_spill]] %s1642_s9  ;;  %p192_p11 = scmp.lt.s32.totalorder %s1249_s28, 5 }
  0x1f   : > { %1645 = sst [smem:[#allocation21_spill]] %s1644_s10  ;;  %s1251_s13 = smov [#allocation5]  }
  0x20   : > { %s1646_s11 = scalar_select %p1381_p10, 1, 0 }
  0x21   : > { %p1386_p12 = pnand %p809_p9, %p192_p11  ;;  %s204_s14 = sshll.u32 %s1251_s13, 4  ;;  %s205_s14 = int_to_ptr.vmem [resolvable:$true] %s204_s14 }
  0x22   : > { %1647 = sst [smem:[#allocation22_spill]] %s1646_s11  ;;  %s1252_s16 = smov [#allocation7]  }
  0x23   : > { %p886_p13 = pneg %p1386_p12  ;;  %s217_s17 = sshll.u32 %s1252_s16, 4  ;;  %s218_s17 = int_to_ptr.vmem [resolvable:$true] %s217_s17 }
  0x24   : > { %s1026_s29 = scalar_lea.vmem %s205_s14, 256  ;;  %p1034_p11 = scmp.lt.s32.totalorder %s205_s14, %s205_s14 }
  0x25   : > { %p1394_p0 = pnand %p886_p13, %p1352_p1  ;;  %p1027_p5 = scmp.ne.s32.totalorder %s205_s14, %s1026_s29 }
  0x26   : > { %p1035_p10 = scmp.lt.s32.totalorder %s1026_s29, %s1026_s29 }
  0x27   : > { %p1017_p3 = pneg %p1394_p0 }
  0x28   : > { %p1036_p6 = por %p1035_p10, %p1034_p11 }
  0x29   : > { %p1029_p7 = pnand %p1027_p5, %p1017_p3 }
  0x2b   : > { %p1030_p9 = pneg %p1029_p7 }
  0x2d   : > { %p1037_p13 = pnand %p1036_p6, %p1030_p9 }
  0x2f   : > { %1040 = shalt.err (!%p1037_p13)
}
  0x30   : > { %s1253_s30 = smov 128   ;;  %s1254_s13 = smov 8  }
  0x31   : > { %s1650_s1 = sld [smem:[#allocation24_spill]]  ;;  %s1052_s18 = scalar_lea.vmem %s218_s17, 512 }
  0x32   : > { %p1053_p8 = scmp.ne.s32.totalorder %s218_s17, %s1052_s18  ;;  %p1060_p1 = scmp.lt.s32.totalorder %s218_s17, %s218_s17 }
  0x33   : > { %p1061_p4 = scmp.lt.s32.totalorder %s1052_s18, %s1052_s18 }
  0x34   : > { %p1055_p5 = pnand %p1053_p8, %p1017_p3 }
  0x35   : > { %p1062_p10 = por %p1061_p4, %p1060_p1 }
  0x36   : > { %p1056_p7 = pneg %p1055_p5 }
  0x37   : > { %889 = dma.hbm_to_vmem [thread:$0]  (!%p1394_p0), %s1650_s1, 256, %s205_s14, [#allocation6], %s1253_s30, %s1253_s30, %s1254_s13  }
  0x38   : > { %p1063_p6 = pnand %p1062_p10, %p1056_p7 }
  0x3a   : > { %1066 = shalt.err (!%p1063_p6)
}
  0x3b   : > { %s1651_s2 = sld [smem:[#allocation25_spill]]  ;;  %s35_s18 = sadd.s32 1, %s1241_s26 }
  0x3c   : > { %s38_s11 = sadd.s32 1, %s1245_s27  ;;  %p36_p1 = scmp.ge.s32.totalorder %s35_s18, 2 }
  0x3d   : > { %s805_s14 = sshll.u32 %s1245_s27, 1  ;;  %s49_s15 = sadd.s32 1, %s1229_s23 }
  0x3e   : > { %s43_s9 = sadd.s32 %s1241_s26, %s805_s14  ;;  %s1687_s18 = smov (%p36_p1, %s35_s18), 0 }
  0x3f   : > { %s1689_s11 = smov (!%p36_p1, %s38_s11), %s1245_s27  ;;  %p56_p4 = scmp.ne.s32.totalorder %s1229_s23, %s1225_s22 }
  0x40   : > { %p57_p8 = scmp.eq.s32.totalorder %s1249_s28, 0  ;;  %p40_p3 = scmp.ge.s32.totalorder %s1689_s11, 2 }
  0x41   : > { %892 = dma.hbm_to_vmem [thread:$0]  (!%p1394_p0), %s1651_s2, 512, %s218_s17, [#allocation6], %s1253_s30, %s1253_s30, %s1254_s13  }
  0x42   : > { %s168_s16 = sadd.s32 1, %s1217_s20  ;;  %p1428_p0 = por %p57_p8, %p56_p4 }
  0x43   : > { %p1434_p9 = por %p1356_p2, %p56_p4  ;;  %s1691_s11 = smov (%p40_p3, %s1689_s11), 0 }
  0x44   : > { %p906_p11 = scmp.lt.s32.totalorder %s1249_s28, 4  ;;  %s234_s13 = sand.u32 1, %s1229_s23  }
  0x45   : > { %s1653_s30 = scalar_select %p1434_p9, 1, 0 }
  0x46   : > { %s806_s29 = sshll.u32 %s1691_s11, 1  ;;  %s165_s14 = ssub.s32 %s1245_s27, %s1691_s11 }
  0x47   : > { %1654 = sst [smem:[#allocation23_spill]] %s1653_s30  ;;  %s45_s1 = sadd.s32 %s806_s29, %s1687_s18 }
  0x48   : > { %p166_p13 = scmp.eq.s32.totalorder %s165_s14, 0  ;;  %s46_s2 = ssub.s32 %s43_s9, %s45_s1 }
  0x49   : > { %p47_p5 = scmp.eq.s32.totalorder %s46_s2, 0  ;;  %s813_s26 = sshll.u32 %s234_s13, 3 }
  0x4a   : > { %s1447_s7 = scalar_select %p166_p13, %s1217_s20, %s168_s16  }
  0x4b   : > { %s1450_s21 = scalar_select %p47_p5, %s1229_s23, %s49_s15  }
  0x4c   : > { %s815_s5 = sshll.u32 %s43_s9, 7  ;;  %s238_s25 = scalar_lea.vmem [#allocation2], %s813_s26 }
  0x4d   : > { %s245_s30 = scalar_lea.hbm %s1607_s0, %s815_s5  ;;  %s247_s24 = sshll.u32 %s238_s25, 4  ;;  %s248_s24 = int_to_ptr.vmem [resolvable:$true] %s247_s24 }
  0x4e   : > { %p1459_p2 = pnand %p906_p11, %p1428_p0  ;;  %s235_s1 = scalar_lea.sflag [#allocation3], %s234_s13 }
  0x4f   : > { %s1080_s2 = scalar_lea.vmem %s248_s24, 128  ;;  %s1255_s9 = smov [#allocation2]  }
  0x50   : > { %p1069_p7 = pneg %p1459_p2  ;;  %p1081_p10 = scmp.ne.s32.totalorder %s248_s24, %s1080_s2 }
  0x51   : > { %s1085_s4 = sshll.u32 %s1255_s9, 4  ;;  %s1086_s4 = int_to_ptr.vmem [resolvable:$false] %s1085_s4 }
  0x52   : > { %p1083_p6 = pnand %p1081_p10, %p1069_p7  ;;  %s1087_s5 = scalar_lea.vmem %s1086_s4, 256 }
  0x53   : > { %p1088_p4 = scmp.lt.s32.totalorder %s248_s24, %s1086_s4  ;;  %p1089_p8 = scmp.lt.s32.totalorder %s1087_s5, %s1080_s2 }
  0x54   : > { %p1084_p1 = pneg %p1083_p6 }
  0x55   : > { %p1090_p3 = por %p1089_p8, %p1088_p4 }
  0x57   : > { %p1091_p13 = pnand %p1090_p3, %p1084_p1 }
  0x59   : > { %1094 = shalt.err (!%p1091_p13)
}
  0x5a   : > { %896 = dma.hbm_to_vmem [thread:$0]  (!%p1459_p2), %s245_s30, 128, %s248_s24, %s235_s1  }
  0x5b   : > { %256 = sbr.rel (%p1386_p12) target bundleno = 1242 (0x4da), region = 36  ;;  %s1470_s25 = sand.u32 (!%p1386_p12), 1, %s1225_s22  }
  0x5c   : > { %s817_s26 = sshll.u32 (!%p1386_p12), %s1470_s25, 3  ;;  %s259_s10 = scalar_lea.sflag (!%p1386_p12), [#allocation3], %s1470_s25 }
  0x5d   : > { %s262_s15 = scalar_lea.vmem (!%p1386_p12), [#allocation2], %s817_s26  ;;  %p1656_p0 = scmp.ne.s32.totalorder (!%p1386_p12), %s1641_s8, 0 }
  0x60   : > { %1192 = dma.done.wait (%p1656_p0), %s259_s10, 128  }
  0x61   : > { %1194 = vsyncadd (%p1656_p0), %s259_s10, 4294967168  ;;  %p1657_p11 = scmp.ne.s32.totalorder %s1639_s6, 0 }
  0x63   : > { %1196 = dma.done.wait (%p1657_p11), [#allocation6], 768  }
  0x64   : > { %1198 = vsyncadd (%p1657_p11), [#allocation6], 4294966528  ;;  %s1629_s24 = sand.u32 1, %s1213_s19   ;;  %v1256_v0 = vmov 0.0   ;;  %vm1257_vm0 = vmmov 0   ;;  %v310_v1 = vld [vmem:[#allocation7 + $0x18] sm:$0xff] }
  0x65   : > { %s1487_s12 = sshll.u32 %s1629_s24, 4  ;;  %849 = vmatprep.subr.mxu0 %v1256_v0  ;;  %857 = vmatprep.mubr.msk.f32.mxu0 %vm1257_vm0, %v1256_v0  ;;  %v309_v2 = vld [vmem:[#allocation7 + $0x10] sm:$0xff]  ;;  %v308_v3 = vld [vmem:[#allocation7 + $0x8] sm:$0xff]  ;;  %v307_v4 = vld [vmem:[#allocation7] sm:$0xff]  ;;  %vm318_vm1 = vcmask 261120   ;;  %vm480_vm2 = vcmask 261248  }
  0x66   : > { %860 = vmatprep.subr.mxu1 %v1256_v0  ;;  %864 = vmatprep.mubr.msk.f32.mxu1 %vm1257_vm0, %v1256_v0  ;;  %v306_v5 = vld [vmem:[%s262_s15] sm:$0xff]  ;;  %vm392_vm3 = vcmask 130048   ;;  %s1258_s16 = smov 112   ;;  %v405_v26 = vld [vmem:[#allocation5 + $0x8] sm:$0xff]  ;;  %v404_v27 = vld [vmem:[#allocation5] sm:$0xff]  ;;  %vm532_vm4 = vcmask 64512  }
  0x67   : > { %850 = vmatpush3.msra.mxu0 %v310_v1  ;;  %v822_v6 = vld [vmem:[%s1610_s3] ss:$0 sm:$0xff]  ;;  %861 = vmatpush3.msra.mxu1 %v405_v26  ;;  %s294_s17 = scalar_lea.vmem [#allocation8], %s817_s26  ;;  %s1501_s30 = scalar_lea.vmem [#allocation9], %s1487_s12 }
  0x68   : > { %851 = vmatprep.subr.mxu0 %v1256_v0  ;;  %862 = vmatprep.subr.mxu1 %v1256_v0  ;;  %s1658_s13 = sld [smem:[#allocation17_spill]] }
  0x69   : > { %852 = vmatpush3.msra.mxu0 %v309_v2  ;;  %863 = vmatpush3.msra.mxu1 %v404_v27 }
  0x6a   : > { %853 = vmatprep.subr.mxu0 %v1256_v0  ;;  %867 = vmatprep.subr.mxu1 %v306_v5 }
  0x6b   : > { %854 = vmatpush3.msra.mxu0 %v308_v3 }
  0x6c   : > { %855 = vmatprep.subr.mxu0 %v1256_v0 }
  0x6d   : > { %856 = vmatpush3.msra.mxu0 %v307_v4 }
  0x6e   : > { %858 = vmatmul.mubr.msk.f32.vlgmr.msra.gmra.mxu0 %vm318_vm1, %v306_v5  ;;  %p827_p12 = scmp.ne.s32.totalorder %s1658_s13, 0 }
 0x12e   : > { %v388_v7 = vpop.f32.mrf.mxu0 }
 0x12f   : > { %v389_v8 = vadd.f32 %v822_v6, %v388_v7 }
 0x130   : > { %v859_v9 = vpop.f32.mrf.mxu0 }
 0x131   : > { %v481_v10 = vsel %vm480_vm2, %v389_v8, -inf  ;;  %v393_v11 = vsel %vm392_vm3, %v389_v8, -inf }
 0x132   : > { %482 = vmax.xlane.f32.xlu0 %v481_v10  ;;  %394 = vmax.xlane.f32.xlu1 %v393_v11 }
 0x1bb   : > { %v483_v12 = vpop.xlane.xlu0 %482  ;;  %v395_v18 = vpop.xlane.xlu1 %394 }
 0x1bc   : > { %v484_v13 = vsub.f32 %v389_v8, %v483_v12  ;;  %v396_v22 = vsub.f32 %v389_v8, %v395_v18 }
 0x1be   : > { %v485_v14 = vmul.f32 1.442695, %v484_v13  ;;  %v397_v23 = vmul.f32 1.442695, %v396_v22 }
 0x1c0   : > { %1007 = vpow2.f32 %v485_v14 }
 0x1cd   : > { %v1008_v15 = vpop.eup %1007 }
 0x1ce   : > { %488 = vrot.lane.b32.xlu0 %v1008_v15, %s1258_s16 }
 0x240   : > { %v489_v16 = vpop.permute.xlu0 %488 }
 0x241   : > { %v491_v17 = vsel %vm392_vm3, %v489_v16, 0.0 }
 0x242   : > { %492 = vadd.xlane.f32.xlu1 %v491_v17 }
 0x2cb   : > { %v493_v19 = vpop.xlane.xlu1 %492 }
 0x2cc   : > { %1009 = vrcp.f32 %v493_v19 }
 0x2cd   : > { %1011 = vpow2.f32 %v397_v23 }
 0x2d9   : > { %v1010_v20 = vpop.eup %1009 }
 0x2da   : > { %v495_v21 = vmul.f32 %v1010_v20, %v1008_v15  ;;  %v1012_v24 = vpop.eup %1011 }
 0x2db   : > { %v399_v25 = vsel %vm392_vm3, %v1012_v24, 0.0 }
 0x2dc   : > { %497 = vrot.lane.b32.xlu1 %v495_v21, %s1258_s16 }
 0x300   : > { %400 = vadd.xlane.f32.xlu1 %v399_v25 }
 0x34e   : > { %v498_v28 = vpop.permute.xlu1 %497 }
 0x34f   : > { %500 = vxpose.xlu0.b32.start.end [1/1] (short) (narrow) %v498_v28, 16 }
 0x389   : > { %v401_v29 = vpop.xlane.xlu1 %400 }
 0x38a   : > { %1013 = vrcp.f32 %v401_v29 }
 0x397   : > { %v1014_v30 = vpop.eup %1013 }
 0x398   : > { %v403_v31 = vmul.f32 %v1014_v30, %v1012_v24 }
 0x39a   : > { %865 = vmatmul.mubr.msk.f32.vlgmr.msra.gmra.mxu1 %vm392_vm3, %v403_v31 }
 0x39b   : > { %868 = vmatpush3.msra.mxu1 %v306_v5 }
 0x3cb   : > { %v516_v32 = vpop.trf.xlu0 }
 0x3cc   : > { %869 = vmatprep.mubr.msk.f32.mxu1 %vm532_vm4, %v516_v32 }
 0x3cf   : > { %v517_v33 = vpop.trf.xlu0 }
 0x3d0   : > { %870 = vmatmul.mubr.msk.f32.vlgmr.msra.gmra.mxu1 %vm532_vm4, %v517_v33 }
 0x45a   : > { %v475_v34 = vpop.f32.mrf.mxu1 }
 0x45b   : > { %479 = vst.msk [vmem:[%s294_s17] sm:$0xff] %vm318_vm1, %v475_v34 }
 0x45c   : > { %v866_v35 = vpop.f32.mrf.mxu1 }
 0x48e   : > { %617 = sbr.rel (%p827_p12) target bundleno = 1172 (0x494), region = 52 }
 0x490   : > { %v871_v36 = vpop.f32.mrf.mxu1 }
 0x492   : > { %v605_v37 = vpop.f32.mrf.mxu1 }
 0x493   : > { %618 = vst.msk [vmem:[%s1501_s30] sm:$0xff] %vm318_vm1, %v605_v37  ;;  %619 = vst.msk [vmem:[%s1501_s30 + $0x8] sm:$0xff] %vm318_vm1, %v871_v36 }
 0x494 PF: > { %s1659_s14 = sld [smem:[#allocation17_spill]] }
 0x49a   : > { %p828_p5 = scmp.eq.s32.totalorder %s1659_s14, 0 }
 0x49c   : > { %623 = sbr.rel (%p828_p5) target bundleno = 1189 (0x4a5), region = 56 }
 0x4a1   : > { %v624_v38 = vld [vmem:[%s1501_s30] sm:$0xff]  ;;  %v625_v39 = vld [vmem:[%s1501_s30 + $0x8] sm:$0xff] }
 0x4a2   : > { %v626_v40 = vadd.f32 %v624_v38, %v605_v37  ;;  %v627_v41 = vadd.f32 %v871_v36, %v625_v39 }
 0x4a4   : > { %628 = vst.msk [vmem:[%s1501_s30] sm:$0xff] %vm318_vm1, %v626_v40  ;;  %629 = vst.msk [vmem:[%s1501_s30 + $0x8] sm:$0xff] %vm318_vm1, %v627_v41 }
 0x4a5 PF: > { %s1660_s29 = sld [smem:[#allocation18_spill]]  ;;  %s651_s5 = sshll.u32 %s294_s17, 4  ;;  %s652_s5 = int_to_ptr.vmem [resolvable:$true] %s651_s5 }
 0x4a6   : > { %s1661_s1 = sld [smem:[#allocation17_spill]]  ;;  %s631_s8 = scalar_lea.sflag [#allocation4], %s1470_s25 }
 0x4a7   : > { %s1663_s12 = sld [smem:[#allocation26_spill]]  ;;  %s1095_s16 = scalar_lea.vmem %s652_s5, 128 }
 0x4a8   : > { %p1096_p2 = scmp.ne.s32.totalorder %s652_s5, %s1095_s16  ;;  %s1259_s13 = smov [#allocation8]  }
 0x4a9   : > { %s1099_s14 = sshll.u32 %s1259_s13, 4  ;;  %s1100_s14 = int_to_ptr.vmem [resolvable:$false] %s1099_s14 }
 0x4aa   : > { %p1097_p7 = pnand %p1096_p2, %p1434_p9  ;;  %s1101_s24 = scalar_lea.vmem %s1100_s14, 256 }
 0x4ab   : > { %s831_s9 = sshll.u32 %s1660_s29, 1  ;;  %p1102_p6 = scmp.lt.s32.totalorder %s652_s5, %s1100_s14 }
 0x4ac   : > { %s644_s4 = sadd.s32 %s1661_s1, %s831_s9  ;;  %p1098_p10 = pneg %p1097_p7 }
 0x4ad   : > { %s832_s26 = sshll.u32 %s644_s4, 7  ;;  %p1103_p1 = scmp.lt.s32.totalorder %s1101_s24, %s1095_s16 }
 0x4ae   : > { %s649_s6 = scalar_lea.hbm %s1663_s12, %s832_s26 }
 0x4af   : > { %p1104_p4 = por %p1103_p1, %p1102_p6 }
 0x4b1   : > { %p1105_p8 = pnand %p1104_p4, %p1098_p10 }
 0x4b3   : > { %1108 = shalt.err (!%p1105_p8)
}
 0x4b4   : > { %s1109_s17 = scalar_lea.hbm %s649_s6, 128  ;;  %s1113_s9 = scalar_lea.hbm %s1663_s12, 512 }
 0x4b5   : > { %p1110_p3 = scmp.ne.s32.totalorder %s649_s6, %s1109_s17  ;;  %p1114_p11 = scmp.lt.s32.totalorder %s649_s6, %s1663_s12 }
 0x4b6   : > { %p1115_p12 = scmp.lt.s32.totalorder %s1113_s9, %s1109_s17 }
 0x4b7   : > { %p1111_p13 = pnand %p1110_p3, %p1434_p9 }
 0x4b8   : > { %p1116_p5 = por %p1115_p12, %p1114_p11 }
 0x4b9   : > { %p1112_p0 = pneg %p1111_p13 }
 0x4bb   : > { %p1117_p2 = pnand %p1116_p5, %p1112_p0 }
 0x4bd   : > { %1120 = shalt.err (!%p1117_p2)
}
 0x4be   : > { %s1664_s24 = sld [smem:[#allocation21_spill]]  ;;  %s837_s10 = sshll.u32 %s1660_s29, 8 }
 0x4bf   : > { %882 = dma.vmem_to_hbm [thread:$0]  (%p1434_p9), %s652_s5, 128, %s649_s6, %s631_s8  }
 0x4c0   : > { %s664_s15 = sshll.u32 %s1501_s30, 4  ;;  %s1665_s14 = sld [smem:[#allocation27_spill]]  ;;  %s1540_s15 = int_to_ptr.vmem [resolvable:$true] %s664_s15 }
 0x4c1   : > { %s1666_s17 = sand.u32 1, %s1213_s19   ;;  %s1121_s2 = scalar_lea.vmem %s1540_s15, 256 }
 0x4c2   : > { %s1544_s1 = scalar_lea.sflag [#allocation10], %s1666_s17  ;;  %p1122_p7 = scmp.ne.s32.totalorder %s1540_s15, %s1121_s2 }
 0x4c3   : > { %s1260_s29 = smov [#allocation9]  }
 0x4c4   : > { %p1667_p10 = scmp.ne.s32.totalorder %s1664_s24, 0  ;;  %s1125_s30 = sshll.u32 %s1260_s29, 4  ;;  %s1126_s30 = int_to_ptr.vmem [resolvable:$false] %s1125_s30 }
 0x4c5   : > { %s1127_s5 = scalar_lea.vmem %s1126_s30, 512  ;;  %p1128_p1 = scmp.lt.s32.totalorder %s1540_s15, %s1126_s30 }
 0x4c6   : > { %s1538_s25 = scalar_lea.hbm %s1665_s14, %s837_s10  ;;  %p1123_p6 = pnand %p1122_p7, %p1667_p10 }
 0x4c7   : > { %p1129_p4 = scmp.lt.s32.totalorder %s1127_s5, %s1121_s2 }
 0x4c8   : > { %p1124_p9 = pneg %p1123_p6 }
 0x4c9   : > { %p1130_p8 = por %p1129_p4, %p1128_p1 }
 0x4cb   : > { %p1131_p3 = pnand %p1130_p8, %p1124_p9 }
 0x4cd   : > { %1134 = shalt.err (!%p1131_p3)
}
 0x4ce   : > { %s1135_s6 = scalar_lea.hbm %s1538_s25, 256  ;;  %s1139_s4 = scalar_lea.hbm %s1665_s14, 512 }
 0x4cf   : > { %p1136_p13 = scmp.ne.s32.totalorder %s1538_s25, %s1135_s6  ;;  %p1140_p12 = scmp.lt.s32.totalorder %s1538_s25, %s1665_s14 }
 0x4d0   : > { %p1141_p5 = scmp.lt.s32.totalorder %s1139_s4, %s1135_s6 }
 0x4d1   : > { %p1137_p0 = pnand %p1136_p13, %p1667_p10 }
 0x4d2   : > { %p1142_p2 = por %p1141_p5, %p1140_p12 }
 0x4d3   : > { %p1138_p11 = pneg %p1137_p0 }
 0x4d5   : > { %p1143_p7 = pnand %p1142_p2, %p1138_p11 }
 0x4d7   : > { %1146 = shalt.err (!%p1143_p7)
}
 0x4d8   : > { %s1261_s16 = smov 128   ;;  %s1262_s13 = smov 8  }
 0x4d9   : > { %883 = dma.vmem_to_hbm [thread:$0]  (%p1667_p10), %s1540_s15, 256, %s1538_s25, %s1544_s1, %s1261_s16, %s1261_s16, %s1262_s13  }
 0x4da PF: > { %s1668_s17 = sld [smem:[#allocation16_spill]]  ;;  %p909_p6 = scmp.ge.s32.totalorder %s1249_s28, 2 }
 0x4db   : > { %s1669_s2 = sld [smem:[#allocation20_spill]] }
 0x4e0   : > { %s679_s29 = sand.u32 1, %s1668_s17  }
 0x4e1   : > { %p1670_p9 = scmp.ne.s32.totalorder %s1669_s2, 0  ;;  %s680_s30 = scalar_lea.sflag [#allocation4], %s679_s29 }
 0x4e3   : > { %p898_p1 = pnand %p909_p6, %p1670_p9 }
 0x4e5   : > { %p899_p4 = pneg %p898_p1 }
 0x4e7   : > { %1200 = dma.done.wait (%p899_p4), %s680_s30, 128  }
 0x4e8   : > { %1202 = vsyncadd (%p899_p4), %s680_s30, 4294967168  ;;  %s1671_s5 = sld [smem:[#allocation15_spill]] }
 0x4e9   : > { %s1672_s6 = sld [smem:[#allocation22_spill]] }
 0x4ee   : > { %s688_s8 = sand.u32 1, %s1671_s5  }
 0x4ef   : > { %p1673_p8 = scmp.ne.s32.totalorder %s1672_s6, 0  ;;  %s689_s24 = scalar_lea.sflag [#allocation10], %s688_s8 }
 0x4f1   : > { %p901_p3 = pnand %p909_p6, %p1673_p8 }
 0x4f3   : > { %p902_p13 = pneg %p901_p3 }
 0x4f5   : > { %1204 = dma.done.wait (%p902_p13), %s689_s24, 256  }
 0x4f6   : > { %1206 = vsyncadd (%p902_p13), %s689_s24, 4294967040  ;;  %s26_s28 = sadd.s32 1, %s1249_s28   ;;  %s1674_s15 = smov %s1450_s21 }
 0x4f7   : > { %p23_p10 = scmp.ge.s32.totalorder %s26_s28, 6   ;;  %s1675_s24 = sld [smem:[#allocation19_spill]] }
 0x4f8   : > { %s1676_s1 = smov %s1687_s18  ;;  %s1677_s18 = smov %s1213_s19 }
 0x4f9   : > { %s1678_s19 = smov %s1217_s20  ;;  %s1679_s20 = smov %s1447_s7 }
 0x4fa   : > { %s1680_s21 = smov %s1225_s22  ;;  %s1681_s22 = smov %s1229_s23 }
 0x4fb   : > { %s1682_s23 = smov %s1674_s15  ;;  %s1683_s25 = smov %s1245_s27 }
 0x4fc   : > { %s1684_s26 = smov %s1676_s1  ;;  %s1685_s27 = smov %s1691_s11 }
 0x4fd   :  { %25 = sbr.rel (!%p23_p10) target bundleno = 17 (0x11), region = 114 }
 0x502   :  { %694 = vsyncpa [#allocation3], 1 }
 0x503   :  { %696 = vsyncpa [#allocation3 + $0x1], 1 }
 0x504   :  { %697 = vsyncpa [#allocation6], 1 }
 0x505   :  { %698 = vsyncpa [#allocation4], 1 }
 0x506   :  { %700 = vsyncpa [#allocation4 + $0x1], 1 }
 0x507   :  { %701 = vsyncpa [#allocation10], 1 }
 0x508   :  { %703 = vsyncpa [#allocation10 + $0x1], 1 }

</bundles_post_ra>
